<compile_context>
chip_gen: v7x
topology: tpu7x:2x2x1
jax: 0.10.0
libtpu: 0.0.40
codegen_flags: <defaults>
</compile_context>

<pallas_src>
import functools

import jax
import jax.numpy as jnp
from jax import lax
from jax.experimental import pallas as pl
from jax.experimental.pallas import tpu as pltpu

_SQRT_HALF = 0.7071067811865476  # 1/sqrt(2)


def _gelu_exact(x):
    # Matches torch.nn.GELU() default (erf-based, not tanh approximation).
    return 0.5 * x * (1.0 + lax.erf(x * _SQRT_HALF))


# --------------------------------------------------------------------------
# Kernels
# --------------------------------------------------------------------------
def _mlp_kernel_resident(x_ref, w1_ref, b1_ref, w2_ref, b2_ref, o_ref):
    """Resident-weights path: one grid step per row tile, no hidden axis.

    x_ref  : (tm, E_p)  bf16
    w1_ref : (E_p, H_p) bf16  (grid-invariant, fetched once)
    b1_ref : (1, H_p)   f32   (grid-invariant)
    w2_ref : (H_p, E_p) bf16  (grid-invariant)
    b2_ref : (1, E_p)   f32   (grid-invariant)
    o_ref  : (tm, E_p)  out dtype
    """
    h = jnp.dot(x_ref[...], w1_ref[...], preferred_element_type=jnp.float32)
    h = _gelu_exact(h + b1_ref[...])          # f32 VPU/EUP math
    # Dropout #1: identity at inference.
    y = jnp.dot(h.astype(w2_ref.dtype), w2_ref[...],
                preferred_element_type=jnp.float32)
    y = _gelu_exact(y + b2_ref[...])
    # Dropout #2: identity at inference.
    o_ref[...] = y.astype(o_ref.dtype)


def _mlp_kernel_streamed(x_ref, w1_ref, b1_ref, w2_ref, b2_ref, o_ref, acc_ref):
    """Hidden-dimension streaming path (weights too large to keep resident).

    Grid = (row tiles, hidden tiles); f32 accumulator across hidden tiles.
    """
    hi = pl.program_id(1)

    @pl.when(hi == 0)
    def _init():
        acc_ref[...] = jnp.zeros_like(acc_ref)

    # First linear + GELU on this hidden slice (GELU is elementwise along H,
    # so applying it per-slice before the second matmul is exact).
    h = jnp.dot(x_ref[...], w1_ref[...], preferred_element_type=jnp.float32)
    h = _gelu_exact(h + b1_ref[...])
    # Dropout #1: identity at inference.
    acc_ref[...] += jnp.dot(h.astype(w2_ref.dtype), w2_ref[...],
                            preferred_element_type=jnp.float32)

    @pl.when(hi == pl.num_programs(1) - 1)
    def _finalize():
        y = _gelu_exact(acc_ref[...] + b2_ref[...])
        # Dropout #2: identity at inference.
        o_ref[...] = y.astype(o_ref.dtype)


# --------------------------------------------------------------------------
# Host-side helpers (all resolved at trace time)
# --------------------------------------------------------------------------
def _round_up(x, m):
    return (x + m - 1) // m * m


def _vmem_budget_bytes():
    """~87.5% of physical VMEM (v5e/v6e 128 MiB -> ~112 MiB, v7x 64 MiB -> 56 MiB)."""
    vmem = 64 << 20  # conservative default (v7x)
    try:
        vmem = int(pltpu.get_tpu_info().vmem_capacity_bytes)
    except Exception:
        pass
    vmem = max(16 << 20, min(vmem, 256 << 20))
    return (vmem * 7) // 8


def _spec(shape, index_map, buffer_count=None):
    """BlockSpec, optionally with an explicit pipeline buffer count."""
    if buffer_count is not None:
        try:
            return pl.BlockSpec(shape, index_map,
                                pipeline_mode=pl.Buffered(buffer_count))
        except (TypeError, AttributeError):
            pass  # fall back to default double-buffering
    return pl.BlockSpec(shape, index_map)


def _pad_cast(a, shape, dtype):
    """Cast / zero-pad only when needed (skips wrapper copies if aligned)."""
    if a.dtype != dtype:
        a = a.astype(dtype)
    if tuple(a.shape) == tuple(shape):
        return a
    pad = [(0, s - d) for s, d in zip(shape, a.shape)]
    return jnp.pad(a, pad)


# --------------------------------------------------------------------------
# Public wrapper
# --------------------------------------------------------------------------
@functools.partial(jax.jit, static_argnames=("operand_dtype",))
def mlp_block(x, w1, b1, w2, b2, *, operand_dtype=jnp.bfloat16):
    """Fused Linear->GELU->Dropout->Linear->GELU->Dropout (inference).

    x: (..., E). Weights use JAX convention W[in, out] (transpose of
    torch.nn.Linear.weight). Returns the same leading shape as x.
    """
    orig_shape = x.shape
    out_dtype = x.dtype
    E = orig_shape[-1]
    H = w1.shape[1]
    x2 = x.reshape(-1, E)
    M = x2.shape[0]

    # ---- Lane-dense / MXU-aligned padded sizes ---------------------------
    E_p = _round_up(E, 128)
    H_p = _round_up(H, 128)

    dsz = jnp.dtype(operand_dtype).itemsize
    osz = jnp.dtype(out_dtype).itemsize
    budget = _vmem_budget_bytes()

    m_cap = max(16, _round_up(M, 16))          # bf16 sublane packing
    tm_cands = [c for c in (512, 384, 256, 128, 64, 32, 16) if c <= m_cap]
    if not tm_cands:
        tm_cands = [16]

    # ---- Resident-weights fast path feasibility ---------------------------
    # Conservative: assume the grid-invariant weight blocks are still
    # double-buffered by the pipeline.
    weight_vmem = 2 * (2 * E_p * H_p * dsz) + 2 * (H_p + E_p) * 4

    def resident_row_bytes(tm):
        return (2 * tm * E_p * dsz            # x row tile (double-buffered)
                + 2 * tm * E_p * osz          # out row tile (double-buffered)
                + 3 * tm * H_p * 4            # matmul-1 f32 output + GELU temps
                + 3 * tm * E_p * 4)           # matmul-2 f32 output + GELU temps

    use_resident = False
    tm = tm_cands[-1]
    vmem_need = 0
    for cand in tm_cands:
        if weight_vmem + resident_row_bytes(cand) <= budget:
            use_resident = True
            tm = cand
            vmem_need = weight_vmem + resident_row_bytes(cand)
            break

    # ---- Streamed path tile selection (only if weights don't fit) --------
    th = 128
    io_buf = 2
    if not use_resident:
        th_cands = [c for c in (1024, 512, 256, 128) if H_p % c == 0]

        def streamed_bytes(tm_, th_, io_):
            return (io_ * tm_ * E_p * dsz          # x row tile
                    + io_ * tm_ * E_p * osz        # out row tile
                    + 2 * E_p * th_ * dsz          # W1 hidden slice (2 bufs)
                    + 2 * th_ * E_p * dsz          # W2 hidden slice (2 bufs)
                    + 2 * th_ * 4 + 2 * E_p * 4    # bias slices
                    + tm_ * E_p * 4                # f32 accumulator scratch
                    + 3 * tm_ * th_ * 4)           # matmul-1 f32 out + GELU temps

        found = False
        for cand_tm in tm_cands:                   # biggest lever: row tile
            for cand_th in th_cands:               # then hidden slice
                for io in (2, 1):                  # then I/O buffering depth
                    if streamed_bytes(cand_tm, cand_th, io) <= budget:
                        tm, th, io_buf = cand_tm, cand_th, io
                        found = True
                        break
                if found:
                    break
            if found:
                break
        if not found:
            tm, th, io_buf = tm_cands[-1], 128, 1
        vmem_need = streamed_bytes(tm, th, io_buf)

    M_p = _round_up(M, tm)

    # ---- Pad + cast operands (padded regions are exact zeros) ------------
    xp = _pad_cast(x2, (M_p, E_p), operand_dtype)
    w1p = _pad_cast(w1, (E_p, H_p), operand_dtype)
    w2p = _pad_cast(w2, (H_p, E_p), operand_dtype)
    b1p = _pad_cast(b1.reshape(1, -1), (1, H_p), jnp.float32)
    b2p = _pad_cast(b2.reshape(1, -1), (1, E_p), jnp.float32)

    # ---- vmem limit: computed working set + headroom, clamped to device --
    vmem_limit = min(max(int(vmem_need * 1.25), 16 << 20), budget)

    # ---- Cost estimate (advisory) -----------------------------------------
    flops = 4 * M_p * E_p * H_p                    # two matmuls, 2*M*K*N each
    transcendentals = M_p * (H_p + E_p)            # one erf per GELU element
    w_hbm = 2 * E_p * H_p * dsz + (H_p + E_p) * 4
    weight_passes = 1 if use_resident else (M_p // tm)
    bytes_accessed = M_p * E_p * (dsz + osz) + w_hbm * weight_passes
    cost = pl.CostEstimate(flops=flops, transcendentals=transcendentals,
                           bytes_accessed=bytes_accessed)

    # ---- Build specs / grid -----------------------------------------------
    if use_resident:
        grid = (M_p // tm,)
        in_specs = [
            _spec((tm, E_p), lambda i: (i, 0)),        # x row tile
            _spec((E_p, H_p), lambda i: (0, 0)),       # W1 (grid-invariant)
            _spec((1, H_p), lambda i: (0, 0)),         # b1 (grid-invariant)
            _spec((H_p, E_p), lambda i: (0, 0)),       # W2 (grid-invariant)
            _spec((1, E_p), lambda i: (0, 0)),         # b2 (grid-invariant)
        ]
        out_spec = _spec((tm, E_p), lambda i: (i, 0))
        scratch = []
        kernel = _mlp_kernel_resident
        dims = ("parallel",)
    else:
        io_bc = None if io_buf == 2 else 1            # single-buffer x/out to fit
        grid = (M_p // tm, H_p // th)
        in_specs = [
            _spec((tm, E_p), lambda i, h: (i, 0), buffer_count=io_bc),  # x
            _spec((E_p, th), lambda i, h: (0, h)),                      # W1 slice
            _spec((1, th),   lambda i, h: (0, h)),                      # b1 slice
            _spec((th, E_p), lambda i, h: (h, 0)),                      # W2 slice
            _spec((1, E_p),  lambda i, h: (0, 0)),                      # b2
        ]
        out_spec = _spec((tm, E_p), lambda i, h: (i, 0), buffer_count=io_bc)
        scratch = [pltpu.VMEM((tm, E_p), jnp.float32)]
        kernel = _mlp_kernel_streamed
        dims = ("parallel", "arbitrary")

    out = pl.pallas_call(
        kernel,
        out_shape=jax.ShapeDtypeStruct((M_p, E_p), out_dtype),
        grid_spec=pltpu.PrefetchScalarGridSpec(
            num_scalar_prefetch=0,
            grid=grid,
            in_specs=in_specs,
            out_specs=out_spec,
            scratch_shapes=scratch,
        ),
        compiler_params=pltpu.CompilerParams(
            dimension_semantics=dims,
            vmem_limit_bytes=vmem_limit,
        ),
        cost_estimate=cost,
    )(xp, w1p, b1p, w2p, b2p)

    return out[:M, :E].reshape(orig_shape)


# --------------------------------------------------------------------------
# References for correctness checks
# --------------------------------------------------------------------------
def _reference_f32(x2, w1, b1, w2, b2):
    h = _gelu_exact(jnp.dot(x2, w1) + b1)
    return _gelu_exact(jnp.dot(h, w2) + b2)


def _reference_mixed(x2, w1, b1, w2, b2):
    # Same precision recipe as the kernel: bf16 MXU operands, f32 accumulation,
    # f32 bias + GELU.
    h = jnp.dot(x2.astype(jnp.bfloat16), w1.astype(jnp.bfloat16),
                preferred_element_type=jnp.float32) + b1
    h = _gelu_exact(h)
    y = jnp.dot(h.astype(jnp.bfloat16), w2.astype(jnp.bfloat16),
                preferred_element_type=jnp.float32) + b2
    return _gelu_exact(y)


if __name__ == "__main__":
    # Module hyperparameters (synthetic, small).
    embedding_dim = 32
    mlp_size = 64
    p_dropout = 0.1  # unused at inference
    batch, seq = 2, 8

    key = jax.random.PRNGKey(0)
    kx, k1, k2, k3, k4 = jax.random.split(key, 5)

    x = jax.random.normal(kx, (batch, seq, embedding_dim), dtype=jnp.float32)

    # Deterministic parameter init (uniform like torch.nn.Linear default scale).
    lim1 = 1.0 / (embedding_dim ** 0.5)
    lim2 = 1.0 / (mlp_size ** 0.5)
    w1 = jax.random.uniform(k1, (embedding_dim, mlp_size), jnp.float32, -lim1, lim1)
    b1 = jax.random.uniform(k2, (mlp_size,), jnp.float32, -lim1, lim1)
    w2 = jax.random.uniform(k3, (mlp_size, embedding_dim), jnp.float32, -lim2, lim2)
    b2 = jax.random.uniform(k4, (embedding_dim,), jnp.float32, -lim2, lim2)

    out = jax.block_until_ready(mlp_block(x, w1, b1, w2, b2))
    assert out.shape == x.shape

    x2 = x.reshape(-1, embedding_dim)
    ref_mixed = _reference_mixed(x2, w1, b1, w2, b2).reshape(x.shape)
    ref_f32 = _reference_f32(x2, w1, b1, w2, b2).reshape(x.shape)

    # Tight check against a reference using the same mixed precision as the
    # kernel; loose sanity check against the all-f32 reference (bf16 operands
    # introduce ~1e-2-scale differences by design).
    assert jnp.allclose(out, ref_mixed, atol=1e-3, rtol=1e-3), \
        "mismatch vs mixed-precision reference"
    assert jnp.allclose(out, ref_f32, atol=1e-1, rtol=5e-2), \
        "mismatch vs f32 reference"

    print("KERNEL_OK")
</pallas_src>

<mosaic_0001>
module attributes {stable_mosaic.version = 11 : i64} {
  func.func @_mlp_kernel_resident(%arg0: i32, %arg1: memref<16x128xbf16, #tpu.memory_space<vmem>>, %arg2: memref<128x128xbf16, #tpu.memory_space<vmem>>, %arg3: memref<1x128xf32, #tpu.memory_space<vmem>>, %arg4: memref<128x128xbf16, #tpu.memory_space<vmem>>, %arg5: memref<1x128xf32, #tpu.memory_space<vmem>>, %arg6: memref<16x128xf32, #tpu.memory_space<vmem>>) attributes {dimension_semantics = [#tpu.dimension_semantics<parallel>], iteration_bounds = array<i64: 1>, scalar_prefetch = 0 : i64, scratch_operands = 0 : i64, tpu.core_type = #tpu.core_type<tc>, window_params = [{transform_indices = @transform_0, window_bounds = array<i64: 16, 128>}, {pipeline_mode = #tpu.pipeline_mode<synchronous>, transform_indices = @transform_1, window_bounds = array<i64: 128, 128>}, {pipeline_mode = #tpu.pipeline_mode<synchronous>, transform_indices = @transform_2, window_bounds = array<i64: 1, 128>}, {pipeline_mode = #tpu.pipeline_mode<synchronous>, transform_indices = @transform_3, window_bounds = array<i64: 128, 128>}, {pipeline_mode = #tpu.pipeline_mode<synchronous>, transform_indices = @transform_4, window_bounds = array<i64: 1, 128>}, {transform_indices = @transform_5, window_bounds = array<i64: 16, 128>}]} {
    %c0 = arith.constant 0 : index
    %c0_0 = arith.constant 0 : index
    %0 = vector.load %arg1[%c0, %c0_0] : memref<16x128xbf16, #tpu.memory_space<vmem>>, vector<16x128xbf16>
    %c0_1 = arith.constant 0 : index
    %c0_2 = arith.constant 0 : index
    %1 = vector.load %arg2[%c0_1, %c0_2] : memref<128x128xbf16, #tpu.memory_space<vmem>>, vector<128x128xbf16>
    %cst = arith.constant dense<0.000000e+00> : vector<16x128xf32>
    %2 = tpu.matmul %0, %1, %cst {dimension_numbers = #tpu.dot_dimension_numbers<[1], [0], [0], [1], [0, 0, 1, 1], [], []>} : vector<16x128xbf16>, vector<128x128xbf16>, vector<16x128xf32> -> vector<16x128xf32>
    %c0_3 = arith.constant 0 : index
    %c0_4 = arith.constant 0 : index
    %3 = vector.load %arg3[%c0_3, %c0_4] : memref<1x128xf32, #tpu.memory_space<vmem>>, vector<1x128xf32>
    %4 = vector.broadcast %3 : vector<1x128xf32> to vector<16x128xf32>
    %5 = arith.addf %2, %4 : vector<16x128xf32>
    %cst_5 = arith.constant 5.000000e-01 : f32
    %6 = vector.broadcast %cst_5 : f32 to vector<16x128xf32>
    %7 = arith.mulf %6, %5 : vector<16x128xf32>
    %cst_6 = arith.constant 0.707106769 : f32
    %8 = vector.broadcast %cst_6 : f32 to vector<16x128xf32>
    %9 = arith.mulf %5, %8 : vector<16x128xf32>
    %10 = math.erf %9 : vector<16x128xf32>
    %cst_7 = arith.constant 1.000000e+00 : f32
    %11 = vector.broadcast %cst_7 : f32 to vector<16x128xf32>
    %12 = arith.addf %11, %10 : vector<16x128xf32>
    %13 = arith.mulf %7, %12 : vector<16x128xf32>
    %14 = arith.truncf %13 : vector<16x128xf32> to vector<16x128xbf16>
    %c0_8 = arith.constant 0 : index
    %c0_9 = arith.constant 0 : index
    %15 = vector.load %arg4[%c0_8, %c0_9] : memref<128x128xbf16, #tpu.memory_space<vmem>>, vector<128x128xbf16>
    %cst_10 = arith.constant dense<0.000000e+00> : vector<16x128xf32>
    %16 = tpu.matmul %14, %15, %cst_10 {dimension_numbers = #tpu.dot_dimension_numbers<[1], [0], [0], [1], [0, 0, 1, 1], [], []>} : vector<16x128xbf16>, vector<128x128xbf16>, vector<16x128xf32> -> vector<16x128xf32>
    %c0_11 = arith.constant 0 : index
    %c0_12 = arith.constant 0 : index
    %17 = vector.load %arg5[%c0_11, %c0_12] : memref<1x128xf32, #tpu.memory_space<vmem>>, vector<1x128xf32>
    %18 = vector.broadcast %17 : vector<1x128xf32> to vector<16x128xf32>
    %19 = arith.addf %16, %18 : vector<16x128xf32>
    %cst_13 = arith.constant 5.000000e-01 : f32
    %20 = vector.broadcast %cst_13 : f32 to vector<16x128xf32>
    %21 = arith.mulf %20, %19 : vector<16x128xf32>
    %cst_14 = arith.constant 0.707106769 : f32
    %22 = vector.broadcast %cst_14 : f32 to vector<16x128xf32>
    %23 = arith.mulf %19, %22 : vector<16x128xf32>
    %24 = math.erf %23 : vector<16x128xf32>
    %cst_15 = arith.constant 1.000000e+00 : f32
    %25 = vector.broadcast %cst_15 : f32 to vector<16x128xf32>
    %26 = arith.addf %25, %24 : vector<16x128xf32>
    %27 = arith.mulf %21, %26 : vector<16x128xf32>
    %c0_16 = arith.constant 0 : index
    %c0_17 = arith.constant 0 : index
    %28 = vector.load %arg6[%c0_16, %c0_17] : memref<16x128xf32, #tpu.memory_space<vmem>>, vector<16x128xf32>
    tpu.vector_store %arg6[%c0_16, %c0_17], %27 {strides = array<i32>} : memref<16x128xf32, #tpu.memory_space<vmem>>, vector<16x128xf32>,
    return
  }
  func.func @transform_0(%arg0: i32) -> (i32, i32) {
    %c0_i32 = arith.constant 0 : i32
    %c0_i32_0 = arith.constant 0 : i32
    return %arg0, %c0_i32 : i32, i32
  }
  func.func @transform_1(%arg0: i32) -> (i32, i32) {
    %c0_i32 = arith.constant 0 : i32
    %c0_i32_0 = arith.constant 0 : i32
    %c0_i32_1 = arith.constant 0 : i32
    return %c0_i32, %c0_i32_0 : i32, i32
  }
  func.func @transform_2(%arg0: i32) -> (i32, i32) {
    %c0_i32 = arith.constant 0 : i32
    %c0_i32_0 = arith.constant 0 : i32
    %c0_i32_1 = arith.constant 0 : i32
    return %c0_i32, %c0_i32_0 : i32, i32
  }
  func.func @transform_3(%arg0: i32) -> (i32, i32) {
    %c0_i32 = arith.constant 0 : i32
    %c0_i32_0 = arith.constant 0 : i32
    %c0_i32_1 = arith.constant 0 : i32
    return %c0_i32, %c0_i32_0 : i32, i32
  }
  func.func @transform_4(%arg0: i32) -> (i32, i32) {
    %c0_i32 = arith.constant 0 : i32
    %c0_i32_0 = arith.constant 0 : i32
    %c0_i32_1 = arith.constant 0 : i32
    return %c0_i32, %c0_i32_0 : i32, i32
  }
  func.func @transform_5(%arg0: i32) -> (i32, i32) {
    %c0_i32 = arith.constant 0 : i32
    %c0_i32_0 = arith.constant 0 : i32
    return %arg0, %c0_i32 : i32, i32
  }
}

</mosaic_0001>

<bundles_post_ra>
// kernel: mlp_block.1
= control target key start
LH: loop header
LB: loop body
LE: loop exit
PB: predicated region body
PF: predicated region fallthrough
CT: control target
= control target key end

     0   :  { %v384_v0 = vmov 0.0   ;;  %vm385_vm0 = vmmov 0   ;;  %s479_s1 = inlined_call_operand.vmem [shape: bf16[128,128], index: 1, kind: input, shape index: {}]   ;;  %s480_s3 = inlined_call_operand.vmem [shape: bf16[128,128], index: 3, kind: input, shape index: {}]   ;;  %s481_s0 = inlined_call_operand.vmem [shape: bf16[16,128], index: 0, kind: input, shape index: {}]   ;;  %s482_s2 = inlined_call_operand.vmem [shape: f32[1,128], index: 2, kind: input, shape index: {}]   ;;  %s483_s4 = inlined_call_operand.vmem [shape: f32[1,128], index: 4, kind: input, shape index: {}]   ;;  %s484_s5 = inlined_call_operand.vmem [shape: f32[16,128], index: 5, kind: output, shape index: {}]  }
   0x1   :  { %317 = vmatprep.subr.bf16.mxu0 %v384_v0  ;;  %v359_v1 = vld [vmem:[%s479_s1] sm:$0xff]   ;;  %333 = vmatprep.mubr.msk.bf16.mxu0 %vm385_vm0, %v384_v0  ;;  %v360_v2 = vld [vmem:[%s479_s1 + $0x8] sm:$0xff]   ;;  %v361_v3 = vld [vmem:[%s479_s1 + $0x10] sm:$0xff]  }
   0x2   :  { %337 = vmatprep.subr.bf16.mxu1 %v384_v0  ;;  %353 = vmatprep.mubr.msk.bf16.mxu1 %vm385_vm0, %v384_v0  ;;  %v368_v4 = vld [vmem:[%s480_s3] sm:$0xff]   ;;  %v362_v5 = vld [vmem:[%s479_s1 + $0x18] sm:$0xff]   ;;  %v369_v6 = vld [vmem:[%s480_s3 + $0x8] sm:$0xff]  }
   0x3   :  { %318 = vmatpush3.bf16.msra.mxu0 %v359_v1  ;;  %338 = vmatpush3.bf16.msra.mxu1 %v368_v4  ;;  %v363_v7 = vld [vmem:[%s479_s1 + $0x20] sm:$0xff]   ;;  %v364_v8 = vld [vmem:[%s479_s1 + $0x28] sm:$0xff]   ;;  %v365_v9 = vld [vmem:[%s479_s1 + $0x30] sm:$0xff]  }
   0x4   :  { %319 = vmatprep.subr.bf16.mxu0 %v384_v0  ;;  %339 = vmatprep.subr.bf16.mxu1 %v384_v0  ;;  %v366_v10 = vld [vmem:[%s479_s1 + $0x38] sm:$0xff]   ;;  %v367_v11 = vld [vmem:[%s481_s0] sm:$0xff]   ;;  %v370_v12 = vld [vmem:[%s480_s3 + $0x10] sm:$0xff]  }
   0x5   :  { %v371_v13 = vld [vmem:[%s480_s3 + $0x18] sm:$0xff]   ;;  %v372_v14 = vld [vmem:[%s480_s3 + $0x20] sm:$0xff]   ;;  %v373_v15 = vld [vmem:[%s480_s3 + $0x28] sm:$0xff]  }
   0x6   :  { %v374_v16 = vld [vmem:[%s480_s3 + $0x30] sm:$0xff]   ;;  %v375_v17 = vld [vmem:[%s480_s3 + $0x38] sm:$0xff]   ;;  %v280_v18 = vld [vmem:[%s482_s2] ss:$0 sm:$0xff] }
   0x7   :  { %320 = vmatpush3.bf16.msra.mxu0 %v360_v2  ;;  %340 = vmatpush3.bf16.msra.mxu1 %v369_v6  ;;  %v290_v36 = vld [vmem:[%s483_s4] ss:$0 sm:$0xff] }
   0x8   :  { %321 = vmatprep.subr.bf16.mxu0 %v384_v0  ;;  %341 = vmatprep.subr.bf16.mxu1 %v384_v0 }
   0xb   :  { %322 = vmatpush3.bf16.msra.mxu0 %v361_v3  ;;  %342 = vmatpush3.bf16.msra.mxu1 %v370_v12 }
   0xc   :  { %323 = vmatprep.subr.bf16.mxu0 %v384_v0  ;;  %343 = vmatprep.subr.bf16.mxu1 %v384_v0 }
   0xf   :  { %324 = vmatpush3.bf16.msra.mxu0 %v362_v5  ;;  %344 = vmatpush3.bf16.msra.mxu1 %v371_v13 }
  0x10   :  { %325 = vmatprep.subr.bf16.mxu0 %v384_v0  ;;  %345 = vmatprep.subr.bf16.mxu1 %v384_v0 }
  0x13   :  { %326 = vmatpush3.bf16.msra.mxu0 %v363_v7  ;;  %346 = vmatpush3.bf16.msra.mxu1 %v372_v14 }
  0x14   :  { %327 = vmatprep.subr.bf16.mxu0 %v384_v0  ;;  %347 = vmatprep.subr.bf16.mxu1 %v384_v0 }
  0x17   :  { %328 = vmatpush3.bf16.msra.mxu0 %v364_v8  ;;  %348 = vmatpush3.bf16.msra.mxu1 %v373_v15 }
  0x18   :  { %329 = vmatprep.subr.bf16.mxu0 %v384_v0  ;;  %349 = vmatprep.subr.bf16.mxu1 %v384_v0 }
  0x1b   :  { %330 = vmatpush3.bf16.msra.mxu0 %v365_v9  ;;  %350 = vmatpush3.bf16.msra.mxu1 %v374_v16 }
  0x1c   :  { %331 = vmatprep.subr.bf16.mxu0 %v384_v0  ;;  %351 = vmatprep.subr.bf16.mxu1 %v384_v0 }
  0x1f   :  { %332 = vmatpush3.bf16.msra.mxu0 %v366_v10  ;;  %352 = vmatpush3.bf16.msra.mxu1 %v375_v17 }
  0x22   :  { %334 = vmatmul.mubr.bf16.vlgmr.msra.gmra.mrb[0].mxu0 %v367_v11 }
  0xf5   :  { %v134_v19 = vpop.f32.mrb[0].mxu0 }
  0xf6   :  { %v135_v20 = vadd.f32 %v280_v18, %v134_v19  ;;  %v335_v21 = vpop.f32.mrb[1].mxu0 }
  0xf7   :  { %v137_v22 = vpop.f32.mrb[2].mxu0 }
  0xf8   :  { %v143_v23 = vmul.f32 0.70710677, %v135_v20  ;;  %v138_v24 = vadd.f32 %v280_v18, %v137_v22  ;;  %v336_v25 = vpop.f32.mrb[3].mxu0  ;;  %v141_v30 = vmul.f32 0.5, %v135_v20 }
  0xfa   :  { %376 = verf.f32 %v143_v23  ;;  %v144_v26 = vmul.f32 0.70710677, %v138_v24  ;;  %v142_v31 = vmul.f32 0.5, %v138_v24 }
  0xfc   :  { %378 = verf.f32 %v144_v26 }
 0x104   :  { %v377_v27 = vpop.eup %376 }
 0x105   :  { %v147_v28 = vadd.f32 1.0, %v377_v27 }
 0x106   :  { %v379_v29 = vpop.eup %378 }
 0x107   :  { %v148_v32 = vadd.f32 1.0, %v379_v29  ;;  %v149_v33 = vmul.f32 %v147_v28, %v141_v30 }
 0x109   :  { %v150_v34 = vmul.f32 %v148_v32, %v142_v31 }
 0x10b   :  { %v151_v35 = vpack.c.bf16 %v150_v34, %v149_v33 }
 0x10d   :  { %354 = vmatmul.mubr.bf16.vlgmr.msra.gmra.mrb[0].mxu1 %v151_v35 }
 0x1e0   :  { %v257_v37 = vpop.f32.mrb[0].mxu1 }
 0x1e1   :  { %v258_v38 = vadd.f32 %v290_v36, %v257_v37  ;;  %v355_v39 = vpop.f32.mrb[1].mxu1 }
 0x1e2   :  { %v260_v40 = vpop.f32.mrb[2].mxu1 }
 0x1e3   :  { %v266_v41 = vmul.f32 0.70710677, %v258_v38  ;;  %v261_v42 = vadd.f32 %v290_v36, %v260_v40  ;;  %v356_v43 = vpop.f32.mrb[3].mxu1  ;;  %v264_v46 = vmul.f32 0.5, %v258_v38 }
 0x1e5   :  { %380 = verf.f32 %v266_v41  ;;  %v267_v44 = vmul.f32 0.70710677, %v261_v42  ;;  %v265_v50 = vmul.f32 0.5, %v261_v42 }
 0x1e7   :  { %382 = verf.f32 %v267_v44 }
 0x1ef   :  { %v381_v45 = vpop.eup %380 }
 0x1f0   :  { %v270_v47 = vadd.f32 1.0, %v381_v45 }
 0x1f1   :  { %v383_v48 = vpop.eup %382 }
 0x1f2   :  { %v272_v49 = vmul.f32 %v270_v47, %v264_v46  ;;  %v271_v51 = vadd.f32 1.0, %v383_v48 }
 0x1f4   :  { %274 = vst [vmem:[%s484_s5] sm:$0xff] %v272_v49  ;;  %v273_v52 = vmul.f32 %v271_v51, %v265_v50 }
 0x1f6   :  { %275 = vst [vmem:[%s484_s5 + $0x8] sm:$0xff] %v273_v52 }

</bundles_post_ra>
